<compile_context>
chip_gen: v7x
topology: tpu7x:2x2x1
jax: 0.10.0
libtpu: 0.0.40
codegen_flags: <defaults>
</compile_context>

<pallas_src>
import math

import jax
import jax.numpy as jnp
from jax.experimental import pallas as pl
from jax.experimental.pallas import tpu as pltpu


# --- exact-GELU helper (erf via Abramowitz & Stegun 7.1.26, f32) --------------
_ERF_P = 0.3275911
_ERF_A1 = 0.254829592
_ERF_A2 = -0.284496736
_ERF_A3 = 1.421413741
_ERF_A4 = -1.453152027
_ERF_A5 = 1.061405429
_INV_SQRT2 = 1.0 / math.sqrt(2.0)


def _erf_f32(z):
    a = jnp.abs(z)
    t = 1.0 / (1.0 + _ERF_P * a)
    poly = ((((_ERF_A5 * t + _ERF_A4) * t + _ERF_A3) * t + _ERF_A2) * t + _ERF_A1) * t
    e = 1.0 - poly * jnp.exp(-a * a)
    return jnp.where(z < 0.0, -e, e)


def _gelu_exact_f32(h):
    # 0.5 * h * (1 + erf(h / sqrt(2)))  -- matches torch.nn.GELU() (exact form)
    # to ~1.5e-7 absolute error.
    return 0.5 * h * (1.0 + _erf_f32(h * _INV_SQRT2))


# --- kernel -------------------------------------------------------------------
def _ffn_kernel(x_ref, w1_ref, b1_ref, w2_ref, b2_ref, out_ref):
    # x_ref:  (TM, E)  bf16      w1_ref: (E, 4E) bf16    b1_ref: (1, 4E) f32
    # w2_ref: (4E, E)  bf16      b2_ref: (1, E)  f32     out_ref: (TM, E) f32
    x = x_ref[...]                                            # bf16

    # Linear 1: bf16 operands, f32 accumulation on the MXU; bias add in f32.
    h = jnp.dot(x, w1_ref[...], preferred_element_type=jnp.float32) + b1_ref[...]

    # GELU (exact/erf form) in f32 on VPU + EUP (exp).
    h = _gelu_exact_f32(h)

    # Linear 2: cast activations to bf16 for the MXU, accumulate in f32.
    out = jnp.dot(h.astype(jnp.bfloat16), w2_ref[...],
                  preferred_element_type=jnp.float32) + b2_ref[...]

    # TODO(synk): Dropout(p=0.1) is identity in eval/inference mode; no dropout
    # path (pltpu.prng_*) is implemented here.
    out_ref[...] = out.astype(out_ref.dtype)


# --- wrapper ------------------------------------------------------------------
def feed_forward(x, params):
    """x: (B, S, E) f32.  params: w1 (E, 4E), b1 (4E,), w2 (4E, E), b2 (E,)."""
    B, S, E = x.shape
    H = params["w1"].shape[1]          # 4 * E
    M = B * S

    # Flatten batch*seq into the matmul M dimension; cast matmul operands to
    # bf16 in the wrapper (halves x/weight HBM bytes), keep biases in f32.
    x2d = x.reshape(M, E).astype(jnp.bfloat16)
    w1 = params["w1"].astype(jnp.bfloat16)
    w2 = params["w2"].astype(jnp.bfloat16)
    b1 = params["b1"].reshape(1, H).astype(jnp.float32)
    b2 = params["b2"].reshape(1, E).astype(jnp.float32)

    # One row-tile per grid step; at these sizes the whole problem is a single
    # block.  (For real BERT sizes TM caps at 512 rows and the grid grows,
    # giving the v7x megacore a parallel extent > 1.)
    TM = M if M <= 512 else 512
    grid = (pl.cdiv(M, TM),)

    cost = pl.CostEstimate(
        flops=4 * M * E * H,                       # 2*M*E*H + 2*M*H*E
        transcendentals=M * H,                     # exp inside GELU/erf
        bytes_accessed=(M * E * 2                  # x (bf16)
                        + E * H * 2 + H * 4        # W1 (bf16) + b1 (f32)
                        + H * E * 2 + E * 4        # W2 (bf16) + b2 (f32)
                        + M * E * 4),              # out (f32)
    )

    out2d = pl.pallas_call(
        _ffn_kernel,
        out_shape=jax.ShapeDtypeStruct((M, E), jnp.float32),
        grid=grid,
        in_specs=[
            pl.BlockSpec((TM, E), lambda i: (i, 0)),   # x rows
            pl.BlockSpec((E, H), lambda i: (0, 0)),    # W1 (VMEM-resident)
            pl.BlockSpec((1, H), lambda i: (0, 0)),    # b1
            pl.BlockSpec((H, E), lambda i: (0, 0)),    # W2
            pl.BlockSpec((1, E), lambda i: (0, 0)),    # b2
        ],
        out_specs=pl.BlockSpec((TM, E), lambda i: (i, 0)),
        compiler_params=pltpu.CompilerParams(
            dimension_semantics=("parallel",)),
        cost_estimate=cost,
    )(x2d, w1, b1, w2, b2)

    return out2d.reshape(B, S, E)


# --- pure-JAX reference (same bf16-operand / f32-accumulate numerics) ---------
def _reference(x, params):
    B, S, E = x.shape
    xb = x.reshape(B * S, E).astype(jnp.bfloat16)
    h = jnp.dot(xb, params["w1"].astype(jnp.bfloat16),
                preferred_element_type=jnp.float32) + params["b1"]
    h = jax.nn.gelu(h, approximate=False)          # exact erf GELU (torch default)
    out = jnp.dot(h.astype(jnp.bfloat16), params["w2"].astype(jnp.bfloat16),
                  preferred_element_type=jnp.float32) + params["b2"]
    return out.reshape(B, S, E)


if __name__ == "__main__":
    # Small shapes consistent with the module: batch=2, seq=8, n_embed=32,
    # hidden = 4*n_embed = 128 (lane-dense intermediate).
    B, S, E = 2, 8, 32
    H = 4 * E

    key = jax.random.PRNGKey(0)
    kx, kw1, kb1, kw2, kb2 = jax.random.split(key, 5)

    x = jax.random.normal(kx, (B, S, E), dtype=jnp.float32)

    # Deterministic "Linear" params stored as (in_features, out_features),
    # torch-style U(-1/sqrt(fan_in), 1/sqrt(fan_in)) init.
    bound1 = 1.0 / math.sqrt(E)
    bound2 = 1.0 / math.sqrt(H)
    params = {
        "w1": jax.random.uniform(kw1, (E, H), jnp.float32, -bound1, bound1),
        "b1": jax.random.uniform(kb1, (H,), jnp.float32, -bound1, bound1),
        "w2": jax.random.uniform(kw2, (H, E), jnp.float32, -bound2, bound2),
        "b2": jax.random.uniform(kb2, (E,), jnp.float32, -bound2, bound2),
    }

    out = feed_forward(x, params)
    jax.block_until_ready(out)

    ref = _reference(x, params)
    assert out.shape == (B, S, E)
    # bf16-operand matmuls: tolerance at bf16 level (accumulation-order and
    # bf16 rounding differences between MXU kernel and XLA reference).
    max_err = float(jnp.max(jnp.abs(out - ref)))
    assert jnp.allclose(out, ref, atol=5e-3, rtol=5e-3), (
        f"mismatch vs reference (max abs err {max_err})")

    print("KERNEL_OK")
</pallas_src>

<mosaic_0001>
module attributes {stable_mosaic.version = 11 : i64} {
  func.func @_ffn_kernel(%arg0: i32, %arg1: memref<16x32xbf16, #tpu.memory_space<vmem>>, %arg2: memref<32x128xbf16, #tpu.memory_space<vmem>>, %arg3: memref<1x128xf32, #tpu.memory_space<vmem>>, %arg4: memref<128x32xbf16, #tpu.memory_space<vmem>>, %arg5: memref<1x32xf32, #tpu.memory_space<vmem>>, %arg6: memref<16x32xf32, #tpu.memory_space<vmem>>) attributes {dimension_semantics = [#tpu.dimension_semantics<parallel>], iteration_bounds = array<i64: 1>, scalar_prefetch = 0 : i64, scratch_operands = 0 : i64, tpu.core_type = #tpu.core_type<tc>, window_params = [{transform_indices = @transform_0, window_bounds = array<i64: 16, 32>}, {pipeline_mode = #tpu.pipeline_mode<synchronous>, transform_indices = @transform_1, window_bounds = array<i64: 32, 128>}, {pipeline_mode = #tpu.pipeline_mode<synchronous>, transform_indices = @transform_2, window_bounds = array<i64: 1, 128>}, {pipeline_mode = #tpu.pipeline_mode<synchronous>, transform_indices = @transform_3, window_bounds = array<i64: 128, 32>}, {pipeline_mode = #tpu.pipeline_mode<synchronous>, transform_indices = @transform_4, window_bounds = array<i64: 1, 32>}, {transform_indices = @transform_5, window_bounds = array<i64: 16, 32>}]} {
    %c0 = arith.constant 0 : index
    %c0_0 = arith.constant 0 : index
    %0 = vector.load %arg1[%c0, %c0_0] : memref<16x32xbf16, #tpu.memory_space<vmem>>, vector<16x32xbf16>
    %c0_1 = arith.constant 0 : index
    %c0_2 = arith.constant 0 : index
    %1 = vector.load %arg2[%c0_1, %c0_2] : memref<32x128xbf16, #tpu.memory_space<vmem>>, vector<32x128xbf16>
    %cst = arith.constant dense<0.000000e+00> : vector<16x128xf32>
    %2 = tpu.matmul %0, %1, %cst {dimension_numbers = #tpu.dot_dimension_numbers<[1], [0], [0], [1], [0, 0, 1, 1], [], []>} : vector<16x32xbf16>, vector<32x128xbf16>, vector<16x128xf32> -> vector<16x128xf32>
    %c0_3 = arith.constant 0 : index
    %c0_4 = arith.constant 0 : index
    %3 = vector.load %arg3[%c0_3, %c0_4] : memref<1x128xf32, #tpu.memory_space<vmem>>, vector<1x128xf32>
    %4 = vector.broadcast %3 : vector<1x128xf32> to vector<16x128xf32>
    %5 = arith.addf %2, %4 : vector<16x128xf32>
    %cst_5 = arith.constant 5.000000e-01 : f32
    %6 = vector.broadcast %cst_5 : f32 to vector<16x128xf32>
    %7 = arith.mulf %6, %5 : vector<16x128xf32>
    %cst_6 = arith.constant 0.707106769 : f32
    %8 = vector.broadcast %cst_6 : f32 to vector<16x128xf32>
    %9 = arith.mulf %5, %8 : vector<16x128xf32>
    %10 = math.absf %9 : vector<16x128xf32>
    %cst_7 = arith.constant 0.327591091 : f32
    %11 = vector.broadcast %cst_7 : f32 to vector<16x128xf32>
    %12 = arith.mulf %11, %10 : vector<16x128xf32>
    %cst_8 = arith.constant 1.000000e+00 : f32
    %13 = vector.broadcast %cst_8 : f32 to vector<16x128xf32>
    %14 = arith.addf %13, %12 : vector<16x128xf32>
    %cst_9 = arith.constant 1.000000e+00 : f32
    %15 = vector.broadcast %cst_9 : f32 to vector<16x128xf32>
    %16 = arith.divf %15, %14 : vector<16x128xf32>
    %cst_10 = arith.constant 1.06140542 : f32
    %17 = vector.broadcast %cst_10 : f32 to vector<16x128xf32>
    %18 = arith.mulf %17, %16 : vector<16x128xf32>
    %cst_11 = arith.constant -1.45315206 : f32
    %19 = vector.broadcast %cst_11 : f32 to vector<16x128xf32>
    %20 = arith.addf %18, %19 : vector<16x128xf32>
    %21 = arith.mulf %20, %16 : vector<16x128xf32>
    %cst_12 = arith.constant 1.42141378 : f32
    %22 = vector.broadcast %cst_12 : f32 to vector<16x128xf32>
    %23 = arith.addf %21, %22 : vector<16x128xf32>
    %24 = arith.mulf %23, %16 : vector<16x128xf32>
    %cst_13 = arith.constant -0.284496725 : f32
    %25 = vector.broadcast %cst_13 : f32 to vector<16x128xf32>
    %26 = arith.addf %24, %25 : vector<16x128xf32>
    %27 = arith.mulf %26, %16 : vector<16x128xf32>
    %cst_14 = arith.constant 0.254829586 : f32
    %28 = vector.broadcast %cst_14 : f32 to vector<16x128xf32>
    %29 = arith.addf %27, %28 : vector<16x128xf32>
    %30 = arith.mulf %29, %16 : vector<16x128xf32>
    %cst_15 = arith.constant 0.000000e+00 : f32
    %31 = vector.broadcast %cst_15 : f32 to vector<16x128xf32>
    %32 = arith.subf %31, %10 : vector<16x128xf32>
    %33 = arith.mulf %32, %10 : vector<16x128xf32>
    %34 = math.exp %33 : vector<16x128xf32>
    %35 = arith.mulf %30, %34 : vector<16x128xf32>
    %cst_16 = arith.constant 1.000000e+00 : f32
    %36 = vector.broadcast %cst_16 : f32 to vector<16x128xf32>
    %37 = arith.subf %36, %35 : vector<16x128xf32>
    %cst_17 = arith.constant 0.000000e+00 : f32
    %38 = vector.broadcast %cst_17 : f32 to vector<16x128xf32>
    %39 = arith.cmpf olt, %9, %38 : vector<16x128xf32>
    %cst_18 = arith.constant 0.000000e+00 : f32
    %40 = vector.broadcast %cst_18 : f32 to vector<16x128xf32>
    %41 = arith.subf %40, %37 : vector<16x128xf32>
    %42 = arith.select %39, %41, %37 : vector<16x128xi1>, vector<16x128xf32>
    %cst_19 = arith.constant 1.000000e+00 : f32
    %43 = vector.broadcast %cst_19 : f32 to vector<16x128xf32>
    %44 = arith.addf %43, %42 : vector<16x128xf32>
    %45 = arith.mulf %7, %44 : vector<16x128xf32>
    %46 = arith.truncf %45 : vector<16x128xf32> to vector<16x128xbf16>
    %c0_20 = arith.constant 0 : index
    %c0_21 = arith.constant 0 : index
    %47 = vector.load %arg4[%c0_20, %c0_21] : memref<128x32xbf16, #tpu.memory_space<vmem>>, vector<128x32xbf16>
    %cst_22 = arith.constant dense<0.000000e+00> : vector<16x32xf32>
    %48 = tpu.matmul %46, %47, %cst_22 {dimension_numbers = #tpu.dot_dimension_numbers<[1], [0], [0], [1], [0, 0, 1, 1], [], []>} : vector<16x128xbf16>, vector<128x32xbf16>, vector<16x32xf32> -> vector<16x32xf32>
    %c0_23 = arith.constant 0 : index
    %c0_24 = arith.constant 0 : index
    %49 = vector.load %arg5[%c0_23, %c0_24] : memref<1x32xf32, #tpu.memory_space<vmem>>, vector<1x32xf32>
    %50 = vector.broadcast %49 : vector<1x32xf32> to vector<16x32xf32>
    %51 = arith.addf %48, %50 : vector<16x32xf32>
    %c0_25 = arith.constant 0 : index
    %c0_26 = arith.constant 0 : index
    %52 = vector.load %arg6[%c0_25, %c0_26] : memref<16x32xf32, #tpu.memory_space<vmem>>, vector<16x32xf32>
    tpu.vector_store %arg6[%c0_25, %c0_26], %51 {strides = array<i32>} : memref<16x32xf32, #tpu.memory_space<vmem>>, vector<16x32xf32>,
    return
  }
  func.func @transform_0(%arg0: i32) -> (i32, i32) {
    %c0_i32 = arith.constant 0 : i32
    %c0_i32_0 = arith.constant 0 : i32
    return %arg0, %c0_i32 : i32, i32
  }
  func.func @transform_1(%arg0: i32) -> (i32, i32) {
    %c0_i32 = arith.constant 0 : i32
    %c0_i32_0 = arith.constant 0 : i32
    %c0_i32_1 = arith.constant 0 : i32
    return %c0_i32, %c0_i32_0 : i32, i32
  }
  func.func @transform_2(%arg0: i32) -> (i32, i32) {
    %c0_i32 = arith.constant 0 : i32
    %c0_i32_0 = arith.constant 0 : i32
    %c0_i32_1 = arith.constant 0 : i32
    return %c0_i32, %c0_i32_0 : i32, i32
  }
  func.func @transform_3(%arg0: i32) -> (i32, i32) {
    %c0_i32 = arith.constant 0 : i32
    %c0_i32_0 = arith.constant 0 : i32
    %c0_i32_1 = arith.constant 0 : i32
    return %c0_i32, %c0_i32_0 : i32, i32
  }
  func.func @transform_4(%arg0: i32) -> (i32, i32) {
    %c0_i32 = arith.constant 0 : i32
    %c0_i32_0 = arith.constant 0 : i32
    %c0_i32_1 = arith.constant 0 : i32
    return %c0_i32, %c0_i32_0 : i32, i32
  }
  func.func @transform_5(%arg0: i32) -> (i32, i32) {
    %c0_i32 = arith.constant 0 : i32
    %c0_i32_0 = arith.constant 0 : i32
    return %arg0, %c0_i32 : i32, i32
  }
}

</mosaic_0001>

<bundles_post_ra>
// kernel: tpu_custom_call.1
= control target key start
LH: loop header
LB: loop body
LE: loop exit
PB: predicated region body
PF: predicated region fallthrough
CT: control target
= control target key end

     0   :  { %v384_v1 = vmov 0.0   ;;  %vm385_vm0 = vmmov 0   ;;  %vm52_vm1 = vcmask 261120   ;;  %s473_s0 = inlined_call_operand.vmem [shape: bf16[16,32], index: 0, kind: input, shape index: {}]   ;;  %s474_s1 = inlined_call_operand.vmem [shape: bf16[32,128], index: 1, kind: input, shape index: {}]   ;;  %s475_s2 = inlined_call_operand.vmem [shape: f32[1,128], index: 2, kind: input, shape index: {}]   ;;  %s476_s3 = inlined_call_operand.vmem [shape: bf16[128,32], index: 3, kind: input, shape index: {}]   ;;  %s477_s4 = inlined_call_operand.vmem [shape: f32[1,32], index: 4, kind: input, shape index: {}]   ;;  %s478_s5 = inlined_call_operand.hbm [shape: f32[16,32], index: 5, kind: output, shape index: {}]  }
   0x1   :  { %v341_v0 = vld [vmem:[%s474_s1] sm:$0xff]   ;;  %308 = vmatprep.subr.bf16.mxu0 %v384_v1  ;;  %316 = vmatprep.subr.bf16.mxu1 %v384_v1  ;;  %v342_v2 = vld [vmem:[%s474_s1 + $0x8] sm:$0xff]  }
   0x2   :  { %309 = vmatpush3.bf16.msra.mxu0 %v341_v0  ;;  %312 = vmatprep.mubr.msk.bf16.mxu0 %vm385_vm0, %v384_v1  ;;  %v343_v3 = vld [vmem:[%s473_s0] sm:$0xff]  }
   0x3   :  { %310 = vmatprep.subr.bf16.mxu0 %v384_v1  ;;  %332 = vmatprep.mubr.msk.bf16.mxu1 %vm385_vm0, %v384_v1 }
   0x6   :  { %311 = vmatpush3.bf16.msra.mxu0 %v342_v2 }
   0x7   :  { %10 = vsyncpa [#allocation3], 0  ;;  %v344_v4 = vld [vmem:[%s476_s3] sm:$0xff]   ;;  %v345_v5 = vld [vmem:[%s476_s3 + $0x8] sm:$0xff]   ;;  %s386_s15 = smov [#allocation2]  }
   0x8   :  { %317 = vmatpush3.bf16.msra.mxu1 %v344_v4  ;;  %v346_v6 = vld [vmem:[%s476_s3 + $0x10] sm:$0xff]   ;;  %v347_v7 = vld [vmem:[%s476_s3 + $0x18] sm:$0xff]   ;;  %v348_v8 = vld [vmem:[%s476_s3 + $0x20] sm:$0xff]   ;;  %s271_s16 = sshll.u32 %s386_s15, 4  ;;  %s272_s16 = int_to_ptr.vmem [resolvable:$true] %s271_s16 }
   0x9   :  { %313 = vmatmul.mubr.msk.bf16.vlgmr.msra.gmra.mrb[0].mxu0 %vm52_vm1, %v343_v3  ;;  %318 = vmatprep.subr.bf16.mxu1 %v384_v1  ;;  %v349_v9 = vld [vmem:[%s476_s3 + $0x28] sm:$0xff]   ;;  %v350_v10 = vld [vmem:[%s476_s3 + $0x30] sm:$0xff]   ;;  %v351_v11 = vld [vmem:[%s476_s3 + $0x38] sm:$0xff]   ;;  %s360_s17 = scalar_lea.vmem %s272_s16, 256  ;;  %p365_p1 = scmp.lt.s32.totalorder %s272_s16, %s272_s16 }
   0xa   :  { %v282_v12 = vld [vmem:[%s475_s2] ss:$0 sm:$0xff]  ;;  %p361_p0 = scmp.ne.s32.totalorder %s272_s16, %s360_s17  ;;  %p366_p2 = scmp.lt.s32.totalorder %s360_s17, %s360_s17 }
   0xc   :  { %319 = vmatpush3.bf16.msra.mxu1 %v345_v5  ;;  %p367_p3 = por %p366_p2, %p365_p1 }
   0xd   :  { %320 = vmatprep.subr.bf16.mxu1 %v384_v1 }
   0xe   :  { %p368_p4 = pnand %p367_p3, %p361_p0 }
  0x10   :  { %321 = vmatpush3.bf16.msra.mxu1 %v346_v6  ;;  %v287_v6 = vld [vmem:[%s477_s4] ss:$0 sm:$0xff] }
  0x11   :  { %322 = vmatprep.subr.bf16.mxu1 %v384_v1 }
  0x14   :  { %323 = vmatpush3.bf16.msra.mxu1 %v347_v7 }
  0x15   :  { %324 = vmatprep.subr.bf16.mxu1 %v384_v1 }
  0x18   :  { %325 = vmatpush3.bf16.msra.mxu1 %v348_v8 }
  0x19   :  { %326 = vmatprep.subr.bf16.mxu1 %v384_v1 }
  0x1c   :  { %327 = vmatpush3.bf16.msra.mxu1 %v349_v9 }
  0x1d   :  { %328 = vmatprep.subr.bf16.mxu1 %v384_v1 }
  0x20   :  { %329 = vmatpush3.bf16.msra.mxu1 %v350_v10 }
  0x21   :  { %330 = vmatprep.subr.bf16.mxu1 %v384_v1 }
  0x24   :  { %331 = vmatpush3.bf16.msra.mxu1 %v351_v11 }
  0xdc   :  { %v90_v13 = vpop.f32.mrb[0].mxu0 }
  0xdd   :  { %v91_v14 = vadd.f32 %v282_v12, %v90_v13  ;;  %v314_v15 = vpop.f32.mrb[1].mxu0 }
  0xde   :  { %v93_v16 = vpop.f32.mrb[2].mxu0 }
  0xdf   :  { %v99_v17 = vmul.f32 0.70710677, %v91_v14  ;;  %v94_v18 = vadd.f32 %v282_v12, %v93_v16  ;;  %v315_v19 = vpop.f32.mrb[3].mxu0  ;;  %v97_v0 = vmul.f32 0.5, %v91_v14 }
  0xe1   :  { %v101_v20 = vand.u32 2147483647, %v99_v17  ;;  %v100_v21 = vmul.f32 0.70710677, %v94_v18  ;;  %vm141_vm2 = vcmp.lt.f32.partialorder %v99_v17, 0.0  ;;  %v98_v1 = vmul.f32 0.5, %v94_v18 }
  0xe3   :  { %v103_v22 = vmul.f32 0.3275911, %v101_v20  ;;  %v102_v23 = vand.u32 2147483647, %v100_v21  ;;  %v129_v27 = vsub.f32 0.0, %v101_v20  ;;  %vm142_vm3 = vcmp.lt.f32.partialorder %v100_v21, 0.0 }
  0xe5   :  { %v105_v24 = vadd.f32 1.0, %v103_v22  ;;  %v104_v25 = vmul.f32 0.3275911, %v102_v23  ;;  %v130_v28 = vsub.f32 0.0, %v102_v23  ;;  %v131_v30 = vmul.f32 %v129_v27, %v101_v20 }
  0xe7   :  { %352 = vrcp.f32 %v105_v24  ;;  %v106_v26 = vadd.f32 1.0, %v104_v25  ;;  %v132_v34 = vmul.f32 %v130_v28, %v102_v23  ;;  %v133_v35 = vmul.f32 1.442695, %v131_v30 }
  0xe9   :  { %354 = vrcp.f32 %v106_v26  ;;  %v135_v40 = vmul.f32 1.442695, %v132_v34 }
  0xea   :  { %356 = vpow2.f32 %v133_v35 }
  0xeb   :  { %358 = vpow2.f32 %v135_v40 }
  0xf1   :  { %v353_v29 = vpop.eup %352 }
  0xf2   :  { %v111_v31 = vmul.f32 1.0614054, %v353_v29 }
  0xf3   :  { %v355_v32 = vpop.eup %354 }
  0xf4   :  { %v113_v33 = vadd.f32 -1.4531521, %v111_v31  ;;  %v112_v36 = vmul.f32 1.0614054, %v355_v32  ;;  %v357_v51 = vpop.eup %356 }
  0xf5   :  { %v359_v55 = vpop.eup %358 }
  0xf6   :  { %v115_v37 = vmul.f32 %v353_v29, %v113_v33  ;;  %v114_v38 = vadd.f32 -1.4531521, %v112_v36 }
  0xf8   :  { %v117_v39 = vadd.f32 1.4214138, %v115_v37  ;;  %v116_v41 = vmul.f32 %v355_v32, %v114_v38 }
  0xfa   :  { %v119_v42 = vmul.f32 %v353_v29, %v117_v39  ;;  %v118_v43 = vadd.f32 1.4214138, %v116_v41 }
  0xfc   :  { %v121_v44 = vadd.f32 -0.28449672, %v119_v42  ;;  %v120_v45 = vmul.f32 %v355_v32, %v118_v43 }
  0xfe   :  { %v123_v46 = vmul.f32 %v353_v29, %v121_v44  ;;  %v122_v47 = vadd.f32 -0.28449672, %v120_v45 }
 0x100   :  { %v125_v48 = vadd.f32 0.2548296, %v123_v46  ;;  %v124_v49 = vmul.f32 %v355_v32, %v122_v47 }
 0x102   :  { %v127_v50 = vmul.f32 %v353_v29, %v125_v48  ;;  %v126_v52 = vadd.f32 0.2548296, %v124_v49 }
 0x104   :  { %v137_v53 = vmul.f32 %v357_v51, %v127_v50  ;;  %v128_v54 = vmul.f32 %v355_v32, %v126_v52 }
 0x106   :  { %v139_v56 = vsub.f32 1.0, %v137_v53  ;;  %v138_v57 = vmul.f32 %v359_v55, %v128_v54 }
 0x108   :  { %v143_v58 = vsub.f32 0.0, %v139_v56  ;;  %v140_v59 = vsub.f32 1.0, %v138_v57 }
 0x10a   :  { %v145_v60 = vsel %vm141_vm2, %v143_v58, %v139_v56  ;;  %v144_v61 = vsub.f32 0.0, %v140_v59 }
 0x10b   :  { %v147_v62 = vadd.f32 1.0, %v145_v60 }
 0x10c   :  { %v146_v63 = vsel %vm142_vm3, %v144_v61, %v140_v59 }
 0x10d   :  { %v148_v2 = vadd.f32 1.0, %v146_v63  ;;  %v149_v3 = vmul.f32 %v147_v62, %v97_v0 }
 0x10f   :  { %v150_v4 = vmul.f32 %v148_v2, %v98_v1 }
 0x111   :  { %v151_v5 = vpack.c.bf16 %v150_v4, %v149_v3 }
 0x113   :  { %333 = vmatmul.mubr.bf16.vlgmr.msra.gmra.mrb[0].mxu1 %v151_v5 }
 0x1e6   :  { %v257_v7 = vpop.f32.mrb[0].mxu1 }
 0x1e7   :  { %v258_v8 = vadd.f32 %v287_v6, %v257_v7  ;;  %v334_v9 = vpop.f32.mrb[1].mxu1 }
 0x1e8   :  { %v260_v10 = vpop.f32.mrb[2].mxu1 }
 0x1e9   :  { %264 = vst.msk [vmem:[#allocation2] sm:$0xff] %vm52_vm1, %v258_v8  ;;  %v261_v11 = vadd.f32 %v287_v6, %v260_v10  ;;  %v335_v12 = vpop.f32.mrb[3].mxu1 }
 0x1eb   :  { %265 = vst.msk [vmem:[#allocation2 + $0x8] sm:$0xff] %vm52_vm1, %v261_v11 }
 0x1ec   :  { %371 = shalt.err (!%p368_p4)
}
 0x1ed   :  { %s372_s19 = scalar_lea.hbm %s478_s5, 256 }
 0x1ee   :  { %p373_p5 = scmp.ne.s32.totalorder %s478_s5, %s372_s19  ;;  %p376_p6 = scmp.lt.u32.totalorder %s372_s19, %s478_s5 }
 0x1f0   :  { %p378_p7 = pnand %p376_p6, %p373_p5 }
 0x1f2   :  { %381 = shalt.err (!%p378_p7)
}
 0x1f3   :  { %s387_s24 = smov 128   ;;  %s388_s25 = smov 8  }
 0x1f4   :  { %277 = dma.vmem_to_hbm [thread:$0]  %s272_s16, 256, %s478_s5, [#allocation3], %s387_s24, %s387_s24, %s388_s25  }
 0x1f5   :  { %382 = dma.done.wait [#allocation3], 256  }
 0x1f6   :  { %383 = vsyncadd [#allocation3], 4294967040 }
 0x1f7   :  { %281 = vsyncpa [#allocation3], 1 }

</bundles_post_ra>
